<compile_context>
chip_gen: v7x
topology: tpu7x:2x2x1
jax: 0.10.0
libtpu: 0.0.40
codegen_flags: <defaults>
</compile_context>

<pallas_src>
import functools

import jax
import jax.numpy as jnp
from jax import lax
from jax.experimental import pallas as pl
from jax.experimental.pallas import tpu as pltpu

_LANE = 128
_PALLAS_MIN_BYTES = 256 * 1024            # below this, plain JAX is faster
_TARGET_BLOCK_BYTES = 6 * 1024 * 1024     # ~6 MiB/block; x4 with in/out double buffering
_VMEM_LIMIT_BYTES = 48 * 1024 * 1024      # under v7x's 64 MiB physical, above v5e's 16 MiB default
_MIN_GRID_STEPS = 8                       # keep >=2 (ideally >=8) steps for megacore / v7x


def _sublane_multiple(dtype):
    # f32 -> 8, bf16 -> 16, int8/fp8 -> 32 (packed sublane rows).
    itemsize = jnp.dtype(dtype).itemsize
    return max(8, 32 // max(1, itemsize))


def _choose_tile_rows(rows, lane_width, dtype):
    """Row tile for a (rows, lane_width) 2D view.

    VMEM cost is computed from the *lane-padded* width (ceil(width/128)*128),
    not the logical width, so narrow last dims cannot blow the VMEM budget.
    The tile is also capped so the grid keeps >= _MIN_GRID_STEPS steps when
    there is enough work (so both v7x TensorCores get a share).
    """
    sub = _sublane_multiple(dtype)
    itemsize = jnp.dtype(dtype).itemsize
    padded_w = ((lane_width + _LANE - 1) // _LANE) * _LANE
    row_bytes = padded_w * itemsize
    tile = max(sub, (_TARGET_BLOCK_BYTES // max(1, row_bytes)) // sub * sub)
    cap = (rows + _MIN_GRID_STEPS - 1) // _MIN_GRID_STEPS
    cap = max(sub, (cap + sub - 1) // sub * sub)
    tile = min(tile, cap)
    if tile >= rows:
        return rows  # tiny input: a single full-leading-dim block is always legal
    return tile


def _compiler_params():
    return pltpu.CompilerParams(
        dimension_semantics=("parallel",),
        vmem_limit_bytes=_VMEM_LIMIT_BYTES,
    )


# ---------------------------------------------------------------------------
# Kernels
# ---------------------------------------------------------------------------

def _flat_kernel(x_ref, o_ref, *, width, num_motifs, num_kept, tile_rows, row_dependent):
    # x_ref / o_ref: (tile_rows, width), width a multiple of 128 (lane-dense).
    lane = lax.broadcasted_iota(jnp.int32, (1, width), 1)
    if not row_dependent:
        # width % C == 0: channel depends only on the lane (block/row independent).
        if num_motifs & (num_motifs - 1) == 0:
            ch = lane & (num_motifs - 1)          # strength-reduced modulo
        else:
            ch = lane % num_motifs
        mask = ch < num_kept                      # (1, width), broadcast over rows
    else:
        # channel of element (i*tile_rows + r)*width + lane, taken mod C in
        # small pieces so nothing overflows int32 (free VPU filler; HBM-bound).
        i = pl.program_id(0)
        base = ((i % num_motifs) * ((tile_rows * width) % num_motifs)) % num_motifs
        row = lax.broadcasted_iota(jnp.int32, (tile_rows, 1), 0)
        row_ch0 = (base + row * (width % num_motifs)) % num_motifs
        mask = ((row_ch0 + lane) % num_motifs) < num_kept
    x = x_ref[...]
    o_ref[...] = jnp.where(mask, x, 0)


def _wide_kernel(x_ref, o_ref, *, num_kept, c_read, c_out):
    # x_ref: (tile_r, c_read)   o_ref: (tile_r, c_out),  c_read <= c_out, both %128==0.
    lane = lax.broadcasted_iota(jnp.int32, (1, c_read), 1)
    x = x_ref[...]
    o_ref[:, :c_read] = jnp.where(lane < num_kept, x, 0)
    if c_out > c_read:
        # Channels we never keep and never read from HBM: write zeros directly.
        o_ref[:, c_read:] = jnp.zeros((x_ref.shape[0], c_out - c_read), o_ref.dtype)


# ---------------------------------------------------------------------------
# pallas_call wrappers
# ---------------------------------------------------------------------------

def _run_flat(x2d, num_motifs, num_kept, row_dependent):
    rows, width = x2d.shape
    tile_r = _choose_tile_rows(rows, width, x2d.dtype)
    grid = (pl.cdiv(rows, tile_r),)
    kern = functools.partial(
        _flat_kernel, width=width, num_motifs=num_motifs, num_kept=num_kept,
        tile_rows=tile_r, row_dependent=row_dependent)
    return pl.pallas_call(
        kern,
        out_shape=jax.ShapeDtypeStruct(x2d.shape, x2d.dtype),
        grid_spec=pltpu.PrefetchScalarGridSpec(
            num_scalar_prefetch=0,
            grid=grid,
            in_specs=[pl.BlockSpec((tile_r, width), lambda i: (i, 0))],
            out_specs=pl.BlockSpec((tile_r, width), lambda i: (i, 0)),
        ),
        compiler_params=_compiler_params(),
    )(x2d)


def _run_wide(x2d, num_kept, c_read):
    # TODO(synk): optional donated-input variant (input_output_aliases={0: 0})
    # could skip rewriting the kept channels entirely.
    rows, c_out = x2d.shape
    tile_r = _choose_tile_rows(rows, c_out, x2d.dtype)
    grid = (pl.cdiv(rows, tile_r),)
    kern = functools.partial(_wide_kernel, num_kept=num_kept, c_read=c_read, c_out=c_out)
    return pl.pallas_call(
        kern,
        out_shape=jax.ShapeDtypeStruct((rows, c_out), x2d.dtype),
        grid_spec=pltpu.PrefetchScalarGridSpec(
            num_scalar_prefetch=0,
            grid=grid,
            in_specs=[pl.BlockSpec((tile_r, c_read), lambda i: (i, 0))],
            out_specs=pl.BlockSpec((tile_r, c_out), lambda i: (i, 0)),
        ),
        compiler_params=_compiler_params(),
    )(x2d)


# ---------------------------------------------------------------------------
# Public wrapper (mirrors FirstChannelsBottleneck.forward)
# ---------------------------------------------------------------------------

def _pick_flat_width(total):
    # Prefer wide rows (fewer, longer DMA rows); fall back to padding to 512.
    for w in (1024, 512, 256, 128):
        if total % w == 0:
            return w, 0
    w = 512
    return w, (-total) % w


def first_channels_bottleneck(x, *, num_motifs, num_outputs_kept, force_pallas=False):
    assert x.ndim == 3
    assert x.shape[2] == num_motifs, str((x.shape, num_motifs))
    N, L, C = x.shape
    kept = int(min(max(num_outputs_kept, 0), C))

    if kept == C:
        return x
    if kept == 0:
        return jnp.zeros_like(x)

    total = N * L * C
    total_bytes = total * jnp.dtype(x.dtype).itemsize
    if not force_pallas and total_bytes < _PALLAS_MIN_BYTES:
        # Tiny inputs: grid/launch overhead dwarfs the work; XLA fuses this.
        ch = lax.broadcasted_iota(jnp.int32, (1, 1, C), 2)
        return jnp.where(ch < kept, x, 0)

    # Path A: wide C (multiple of 128) with reduced reads -- only the first
    # ceil(kept/128)*128 channels are DMA'd from HBM.
    if C % _LANE == 0:
        c_read = min(C, ((kept + _LANE - 1) // _LANE) * _LANE)
        if c_read < C:
            out = _run_wide(x.reshape(N * L, C), kept, c_read)
            return out.reshape(N, L, C)

    # Path B: lane-dense flat view (rows, W), W a multiple of 128 -> every
    # load/store uses all 128 lanes regardless of C.
    width, pad = _pick_flat_width(total)
    flat = x.reshape(total)
    if pad:
        # TODO(synk): the pad + final slice each cost one extra pass over the
        # array; a manual-DMA ragged-tail kernel could avoid that traffic.
        flat = jnp.pad(flat, (0, pad))
    x2d = flat.reshape(-1, width)
    out2d = _run_flat(x2d, C, kept, row_dependent=(width % C != 0))
    out = out2d.reshape(-1)
    if pad:
        out = out[:total]
    return out.reshape(N, L, C)


# ---------------------------------------------------------------------------
# Demo / correctness checks
# ---------------------------------------------------------------------------

def _reference(x, num_motifs, kept):
    kept = min(max(kept, 0), num_motifs)
    pad = jnp.zeros((x.shape[0], x.shape[1], num_motifs - kept), x.dtype)
    return jnp.concatenate([x[:, :, :kept], pad], axis=2)


if __name__ == "__main__":
    key = jax.random.PRNGKey(0)

    # Test 1: small power-of-two C (lane-dense flat path, row-independent mask).
    num_motifs, kept = 16, 5
    x1 = jax.random.normal(key, (2, 8, num_motifs), dtype=jnp.float32)
    out1 = jax.block_until_ready(first_channels_bottleneck(
        x1, num_motifs=num_motifs, num_outputs_kept=kept, force_pallas=True))
    assert out1.shape == x1.shape
    assert jnp.allclose(out1, _reference(x1, num_motifs, kept)), "mismatch (flat pow2 path)"

    # Test 2: wide C (reduced-read path): only first 128 channels DMA'd from HBM.
    num_motifs2, kept2 = 256, 5
    x2 = jax.random.normal(key, (2, 64, num_motifs2), dtype=jnp.float32)
    out2 = jax.block_until_ready(first_channels_bottleneck(
        x2, num_motifs=num_motifs2, num_outputs_kept=kept2, force_pallas=True))
    assert jnp.allclose(out2, _reference(x2, num_motifs2, kept2)), "mismatch (wide path)"

    # Test 3: C=12, total not a multiple of 128 -> padded lane-dense flat path.
    num_motifs3, kept3 = 12, 5
    x3 = jax.random.normal(key, (2, 8, num_motifs3), dtype=jnp.float32)
    out3 = jax.block_until_ready(first_channels_bottleneck(
        x3, num_motifs=num_motifs3, num_outputs_kept=kept3, force_pallas=True))
    assert jnp.allclose(out3, _reference(x3, num_motifs3, kept3)), "mismatch (padded flat path)"

    # Test 4: C=12, total divisible by 128 -> no-pad flat path, row-dependent mask.
    x4 = jax.random.normal(key, (2, 64, num_motifs3), dtype=jnp.float32)
    out4 = jax.block_until_ready(first_channels_bottleneck(
        x4, num_motifs=num_motifs3, num_outputs_kept=kept3, force_pallas=True))
    assert jnp.allclose(out4, _reference(x4, num_motifs3, kept3)), "mismatch (flat row-dep path)"

    # Test 5: bigger rows -> multi-step grid (exercises min-grid cap), W=1024.
    num_motifs5, kept5 = 16, 3
    x5 = jax.random.normal(key, (2, 512, num_motifs5), dtype=jnp.float32)
    out5 = jax.block_until_ready(first_channels_bottleneck(
        x5, num_motifs=num_motifs5, num_outputs_kept=kept5, force_pallas=True))
    assert jnp.allclose(out5, _reference(x5, num_motifs5, kept5)), "mismatch (multi-block path)"

    print("KERNEL_OK")
</pallas_src>

<mosaic_0001>
module attributes {stable_mosaic.version = 11 : i64} {
  func.func @_flat_kernel(%arg0: i32, %arg1: memref<1x256xf32, #tpu.memory_space<vmem>>, %arg2: memref<1x256xf32, #tpu.memory_space<vmem>>) attributes {dimension_semantics = [#tpu.dimension_semantics<parallel>], iteration_bounds = array<i64: 1>, scalar_prefetch = 0 : i64, scratch_operands = 0 : i64, tpu.core_type = #tpu.core_type<tc>, window_params = [{transform_indices = @transform_0, window_bounds = array<i64: 1, 256>}, {transform_indices = @transform_1, window_bounds = array<i64: 1, 256>}]} {
    %0 = tpu.iota {dimensions = array<i32: 1>} : vector<1x256xi32>
    %c15_i32 = arith.constant 15 : i32
    %1 = vector.broadcast %c15_i32 : i32 to vector<1x256xi32>
    %2 = arith.andi %0, %1 : vector<1x256xi32>
    %c5_i32 = arith.constant 5 : i32
    %3 = vector.broadcast %c5_i32 : i32 to vector<1x256xi32>
    %4 = arith.cmpi slt, %2, %3 : vector<1x256xi32>
    %c0 = arith.constant 0 : index
    %c0_0 = arith.constant 0 : index
    %5 = vector.load %arg1[%c0, %c0_0] : memref<1x256xf32, #tpu.memory_space<vmem>>, vector<1x256xf32>
    %c0_i32 = arith.constant 0 : i32
    %6 = arith.sitofp %c0_i32 : i32 to f32
    %7 = vector.broadcast %6 : f32 to vector<1x256xf32>
    %8 = arith.select %4, %5, %7 : vector<1x256xi1>, vector<1x256xf32>
    %c0_1 = arith.constant 0 : index
    %c0_2 = arith.constant 0 : index
    %9 = vector.load %arg2[%c0_1, %c0_2] : memref<1x256xf32, #tpu.memory_space<vmem>>, vector<1x256xf32>
    tpu.vector_store %arg2[%c0_1, %c0_2], %8 {strides = array<i32>} : memref<1x256xf32, #tpu.memory_space<vmem>>, vector<1x256xf32>,
    return
  }
  func.func @transform_0(%arg0: i32) -> (i32, i32) {
    %c0_i32 = arith.constant 0 : i32
    %c0_i32_0 = arith.constant 0 : i32
    return %arg0, %c0_i32 : i32, i32
  }
  func.func @transform_1(%arg0: i32) -> (i32, i32) {
    %c0_i32 = arith.constant 0 : i32
    %c0_i32_0 = arith.constant 0 : i32
    return %arg0, %c0_i32 : i32, i32
  }
}

</mosaic_0001>

<bundles_post_ra>
// kernel: tpu_custom_call.1
= control target key start
LH: loop header
LB: loop body
LE: loop exit
PB: predicated region body
PF: predicated region fallthrough
CT: control target
= control target key end

     0   :  { %6 = vsyncpa [#allocation3], 0  ;;  %s168_s0 = inlined_call_operand.hbm [shape: f32[1,256], index: 0, kind: input, shape index: {}]   ;;  %s169_s1 = inlined_call_operand.hbm [shape: f32[1,256], index: 1, kind: output, shape index: {}]  }
   0x1   :  { %7 = vsyncpa [#allocation4], 0  ;;  %s131_s6 = smov [#allocation2]   ;;  %s83_s10 = scalar_lea.hbm %s168_s0, 32 }
   0x2   :  { %s14_s7 = sshll.u32 %s131_s6, 4  ;;  %p84_p0 = scmp.ne.s32.totalorder %s168_s0, %s83_s10  ;;  %s15_s7 = int_to_ptr.vmem [resolvable:$true] %s14_s7 }
   0x3   :  { %p87_p1 = scmp.lt.u32.totalorder %s83_s10, %s168_s0 }
   0x5   :  { %p89_p2 = pnand %p87_p1, %p84_p0 }
   0x7   :  { %92 = shalt.err (!%p89_p2)
}
   0x8   :  { %s93_s15 = scalar_lea.vmem %s15_s7, 32  ;;  %p98_p4 = scmp.lt.s32.totalorder %s15_s7, %s15_s7 }
   0x9   :  { %p94_p3 = scmp.ne.s32.totalorder %s15_s7, %s93_s15  ;;  %p99_p5 = scmp.lt.s32.totalorder %s93_s15, %s93_s15 }
   0xb   :  { %p100_p6 = por %p99_p5, %p98_p4 }
   0xd   :  { %p101_p7 = pnand %p100_p6, %p94_p3 }
   0xf   :  { %104 = shalt.err (!%p101_p7)
}
  0x10   :  { %17 = dma.hbm_to_vmem [thread:$0]  %s168_s0, 32, %s15_s7, [#allocation3]  }
  0x11   :  { %127 = dma.done.wait [#allocation3], 32  }
  0x12   :  { %128 = vsyncadd [#allocation3], 4294967264  ;;  %v21_v0 = vlaneseq  ;;  %v132_v1 = vmov 1966171168   ;;  %v28_v11 = vld [vmem:[#allocation2] sm:$0x3] }
  0x13   :  { %v46_v2 = vunpack.c.l.s4 %v132_v1  ;;  %s133_s0 = smov [#allocation5]  }
  0x14   :  { %v22_v3 = vand.u32 127, %v21_v0  ;;  %v31_v4 = vshrl.u32 %v21_v0, 7  ;;  %s71_s18 = sshll.u32 %s133_s0, 4  ;;  %vm62_vm2 = vcmp.lt.s32.totalorder %v21_v0, 256  ;;  %s72_s18 = int_to_ptr.vmem [resolvable:$true] %s71_s18 }
  0x15   :  { %v47_v9 = vunpack.c.0.s8 %v46_v2  ;;  %s105_s19 = scalar_lea.vmem %s72_s18, 32  ;;  %p110_p9 = scmp.lt.s32.totalorder %s72_s18, %s72_s18 }
  0x16   :  { %v23_v5 = vadd.s32 128, %v22_v3  ;;  %v24_v6 = vand.u32 15, %v22_v3  ;;  %v32_v7 = vsub.s32 0, %v31_v4  ;;  %v36_v8 = vsub.s32 1, %v31_v4  ;;  %p106_p8 = scmp.ne.s32.totalorder %s72_s18, %s105_s19  ;;  %p111_p10 = scmp.lt.s32.totalorder %s105_s19, %s105_s19 }
  0x17   :  { %v50_v14 = vsub.s32 %v47_v9, %v31_v4 }
  0x18   :  { %v25_v10 = vand.u32 15, %v23_v5  ;;  %vm26_vm0 = vcmp.lt.s32.totalorder %v24_v6, 5  ;;  %v33_v12 = vrot.slane %v28_v11, %v32_v7  ;;  %v37_v13 = vrot.slane %v28_v11, %v36_v8  ;;  %p112_p11 = por %p111_p10, %p110_p9 }
  0x1a   :  { %vm27_vm1 = vcmp.lt.s32.totalorder %v25_v10, 5  ;;  %v40_v15 = vsel %vm26_vm0, %v33_v12, 0.0  ;;  %p113_p12 = pnand %p112_p11, %p106_p8 }
  0x1b   :  { %v41_v16 = vsel %vm27_vm1, %v37_v13, 0.0 }
  0x1c   :  { %v44_v17 = vcombine.low %v40_v15, %v41_v16 }
  0x1e   :  { %v51_v18 = vrot.slane %v44_v17, %v50_v14 }
  0x20   :  { %v58_v19 = vrot.slane %v51_v18, %v50_v14 }
  0x22   :  { %64 = vst.msk [vmem:[#allocation5] sm:$0x3] %vm62_vm2, %v58_v19 }
  0x23   :  { %116 = shalt.err (!%p113_p12)
}
  0x24   :  { %s117_s22 = scalar_lea.hbm %s169_s1, 32 }
  0x25   :  { %p118_p13 = scmp.ne.s32.totalorder %s169_s1, %s117_s22  ;;  %p121_p0 = scmp.lt.u32.totalorder %s117_s22, %s169_s1 }
  0x27   :  { %p123_p1 = pnand %p121_p0, %p118_p13 }
  0x29   :  { %126 = shalt.err (!%p123_p1)
}
  0x2a   :  { %74 = dma.vmem_to_hbm [thread:$0]  %s72_s18, 32, %s169_s1, [#allocation4]  }
  0x2b   :  { %129 = dma.done.wait [#allocation4], 32  }
  0x2c   :  { %130 = vsyncadd [#allocation4], 4294967264 }
  0x2d   :  { %78 = vsyncpa [#allocation3], 1 }
  0x2e   :  { %79 = vsyncpa [#allocation4], 1 }

</bundles_post_ra>
